<compile_context>
chip_gen: v7x
topology: tpu7x:2x2x1
jax: 0.10.0
libtpu: 0.0.40
codegen_flags: <defaults>
</compile_context>

<pallas_src>
import functools

import numpy as np
import jax
import jax.numpy as jnp
from jax.experimental import pallas as pl
from jax.experimental.pallas import tpu as pltpu


def _round_up(x, m):
    return ((x + m - 1) // m) * m


def _stft_kernel(xt_ref, w_ref, out_ref, frames_ref, *, tm, chunk, j_steps):
    """One fused [real | imag] spectrogram tile.

    xt_ref    : (1, 1, RT, chunk)  hop-chunked signal window for this tile
    w_ref     : (n_fft, tn)        fused windowed DFT weights (bf16)
    out_ref   : (1, tm, tn)        f32 spectrogram tile
    frames_ref: (tm, n_fft)        VMEM scratch for the assembled frame tile
    """
    if j_steps == 1:
        frames = xt_ref[0, 0, :, :]                     # chunk == n_fft already
    else:
        xw = xt_ref[0, 0, :, :]                         # one aligned window load
        for j in range(j_steps):                        # shifted views -> scratch
            frames_ref[:, j * chunk:(j + 1) * chunk] = (
                jax.lax.slice_in_dim(xw, j, j + tm, axis=0))
        frames = frames_ref[...]
    out_ref[0, :, :] = jnp.dot(frames, w_ref[...],
                               preferred_element_type=jnp.float32)


def make_stft_weights(n_fft, win_length=None, window="hann",
                      dtype=jnp.bfloat16):
    """Fused [real | imag] librosa-style windowed DFT weights.

    Returns (W, F): W has shape (n_fft, round_up(2F, 128)) with
    W[:, :F] = cos(2*pi*k*c/n_fft)*win[k], W[:, F:2F] = -sin(...)*win[k]
    (matches DFTBase.dft_matrix + periodic hann, i.e. rfft convention).
    The window is centered to n_fft when win_length < n_fft (librosa-style).
    """
    if win_length is None:
        win_length = n_fft
    if win_length > n_fft:
        raise ValueError("win_length must be <= n_fft")
    if window != "hann":
        # TODO(synk): only periodic 'hann' is built in-script (no librosa dep).
        raise ValueError("only 'hann' supported in this synthetic script")

    n = np.arange(win_length)
    win = 0.5 - 0.5 * np.cos(2.0 * np.pi * n / win_length)    # periodic hann
    fft_window = np.zeros(n_fft, dtype=np.float64)
    lpad = (n_fft - win_length) // 2
    fft_window[lpad:lpad + win_length] = win

    F = n_fft // 2 + 1
    k = np.arange(n_fft)
    c = np.arange(F)
    ang = 2.0 * np.pi * np.outer(k, c) / n_fft                # (n_fft, F)
    wr = np.cos(ang) * fft_window[:, None]
    wi = -np.sin(ang) * fft_window[:, None]

    n_out = _round_up(2 * F, 128)
    W = np.zeros((n_fft, n_out), dtype=np.float32)
    W[:, :F] = wr
    W[:, F:2 * F] = wi
    return jnp.asarray(W, dtype=dtype), F


def stft_forward(x, w_fused, n_fft, hop_length, F,
                 center=True, pad_mode="reflect", tm_max=256,
                 compute_dtype=jnp.bfloat16):
    """x: (B, L) -> (real, imag), each (B, 1, T, n_fft//2+1) float32."""
    assert pad_mode in ("constant", "reflect")
    B, L = x.shape
    x = x.astype(jnp.float32)
    if center:
        if pad_mode == "reflect" and L < n_fft // 2 + 1:
            raise ValueError("reflect padding needs data_length >= n_fft//2 + 1")
        x = jnp.pad(x, ((0, 0), (n_fft // 2, n_fft // 2)), mode=pad_mode)
    Lp = x.shape[1]
    if Lp < n_fft:
        raise ValueError("padded signal shorter than n_fft")
    T = (Lp - n_fft) // hop_length + 1

    tm = min(tm_max, _round_up(T, 8))           # avoid large wasted last tile
    n_t_tiles = pl.cdiv(T, tm)
    T_pad = n_t_tiles * tm

    # ---- per-tile input layout: VMEM use is O(tm), independent of L ----
    if n_fft % hop_length == 0:
        # Fast path: non-overlapping hop-sized chunks; the frame tile is built
        # in-kernel, so HBM holds ~1x the signal (not n_fft/hop x).
        chunk = hop_length
        J = n_fft // hop_length
        RT = _round_up(tm + J - 1, 8)
        n_chunks = (n_t_tiles - 1) * tm + RT
        need = n_chunks * chunk
        xg = jnp.pad(x, ((0, 0), (0, need - Lp))) if need >= Lp else x[:, :need]
        xc = xg.reshape(B, n_chunks, chunk)
        win_idx = (jnp.arange(n_t_tiles) * tm)[:, None] + jnp.arange(RT)[None, :]
        xt = xc[:, win_idx, :]                          # (B, nt, RT, chunk)
    else:
        # TODO(synk): hop not dividing n_fft -> materialized per-tile frames
        # (n_fft/hop HBM blowup); a gcd(hop, n_fft) chunking would avoid it.
        chunk = n_fft
        J = 1
        RT = tm
        need = (T_pad - 1) * hop_length + n_fft
        xg = jnp.pad(x, ((0, 0), (0, need - Lp))) if need >= Lp else x
        fr = (jnp.arange(n_t_tiles) * tm)[:, None] + jnp.arange(RT)[None, :]
        samp = fr[..., None] * hop_length + jnp.arange(n_fft)[None, None, :]
        xt = xg[:, samp]                                # (B, nt, RT, n_fft)

    xt = xt.astype(compute_dtype)
    w_fused = w_fused.astype(compute_dtype)

    # ---- weight feature-axis tiling (keeps the W block bounded for big n_fft)
    n_out = w_fused.shape[1]
    if n_out <= 1024:
        tn = n_out
    else:
        tn = 512
        pad_n = _round_up(n_out, tn) - n_out
        if pad_n:
            w_fused = jnp.pad(w_fused, ((0, 0), (0, pad_n)))
        n_out += pad_n
    n_n_tiles = n_out // tn

    kernel = functools.partial(_stft_kernel, tm=tm, chunk=chunk, j_steps=J)

    flops = 2.0 * B * T_pad * n_fft * n_out
    bytes_accessed = (xt.size * xt.dtype.itemsize
                      + w_fused.size * w_fused.dtype.itemsize
                      + B * T_pad * n_out * 4)

    out = pl.pallas_call(
        kernel,
        out_shape=jax.ShapeDtypeStruct((B, T_pad, n_out), jnp.float32),
        grid_spec=pltpu.PrefetchScalarGridSpec(
            num_scalar_prefetch=0,
            grid=(n_t_tiles, B, n_n_tiles),
            in_specs=[
                # per-(time-tile, batch) chunk window; constant across n tiles
                pl.BlockSpec((1, 1, RT, chunk), lambda t, b, n: (b, t, 0, 0)),
                # fused weights, tiled only along the feature axis
                pl.BlockSpec((n_fft, tn), lambda t, b, n: (0, n)),
            ],
            out_specs=pl.BlockSpec((1, tm, tn), lambda t, b, n: (b, t, n)),
            scratch_shapes=[pltpu.VMEM((tm, n_fft), compute_dtype)],
        ),
        compiler_params=pltpu.CompilerParams(
            dimension_semantics=("parallel", "parallel", "parallel")),
        cost_estimate=pl.CostEstimate(flops=int(flops), transcendentals=0,
                                      bytes_accessed=int(bytes_accessed)),
    )(xt, w_fused)

    real = out[:, :T, :F].reshape(B, 1, T, F)
    imag = out[:, :T, F:2 * F].reshape(B, 1, T, F)
    return real, imag


if __name__ == "__main__":
    # small, module-consistent shapes (STFT defaults scaled down)
    n_fft = 256
    hop_length = 64          # n_fft // 4, the module default
    B, L = 2, 1024

    key = jax.random.PRNGKey(0)
    x = jax.random.normal(key, (B, L), dtype=jnp.float32)

    W, F = make_stft_weights(n_fft)          # fused bf16 [real | imag] weights

    real, imag = stft_forward(x, W, n_fft, hop_length, F,
                              center=True, pad_mode="reflect")
    jax.block_until_ready((real, imag))

    # ---- reference checks ----
    xp = jnp.pad(x, ((0, 0), (n_fft // 2, n_fft // 2)), mode="reflect")
    T = (xp.shape[1] - n_fft) // hop_length + 1
    assert real.shape == (B, 1, T, n_fft // 2 + 1)
    assert imag.shape == (B, 1, T, n_fft // 2 + 1)

    idx = (np.arange(T) * hop_length)[:, None] + np.arange(n_fft)[None, :]
    xp_np = np.asarray(xp, dtype=np.float64)
    frames = xp_np[:, idx]                                   # (B, T, n_fft)

    # 1) exact DFT + window construction check (rfft convention); tolerance is
    #    loose because the kernel quantizes inputs/weights to bf16.
    n = np.arange(n_fft)
    win = 0.5 - 0.5 * np.cos(2.0 * np.pi * n / n_fft)        # periodic hann
    spec = np.fft.rfft(frames * win[None, None, :], axis=-1)
    np.testing.assert_allclose(np.asarray(real)[:, 0], spec.real,
                               rtol=5e-2, atol=6e-1)
    np.testing.assert_allclose(np.asarray(imag)[:, 0], spec.imag,
                               rtol=5e-2, atol=6e-1)

    # 2) tight check against the same bf16-quantized inputs/weights (validates
    #    framing + fused matmul independent of quantization error).
    xq = np.asarray(xp.astype(jnp.bfloat16).astype(jnp.float32),
                    dtype=np.float64)
    Wq = np.asarray(W.astype(jnp.float32), dtype=np.float64)
    fused = np.einsum("btk,kf->btf", xq[:, idx], Wq)
    np.testing.assert_allclose(np.asarray(real)[:, 0], fused[..., :F],
                               rtol=1e-3, atol=5e-3)
    np.testing.assert_allclose(np.asarray(imag)[:, 0], fused[..., F:2 * F],
                               rtol=1e-3, atol=5e-3)

    print("KERNEL_OK")
</pallas_src>

<mosaic_0001>
module attributes {stable_mosaic.version = 11 : i64} {
  func.func @_stft_kernel(%arg0: i32, %arg1: i32, %arg2: i32, %arg3: memref<1x1x32x64xbf16, #tpu.memory_space<vmem>>, %arg4: memref<256x384xbf16, #tpu.memory_space<vmem>>, %arg5: memref<1x24x384xf32, #tpu.memory_space<vmem>>, %arg6: memref<24x256xbf16, #tpu.memory_space<vmem>>) attributes {dimension_semantics = [#tpu.dimension_semantics<parallel>, #tpu.dimension_semantics<parallel>, #tpu.dimension_semantics<parallel>], iteration_bounds = array<i64: 1, 2, 1>, scalar_prefetch = 0 : i64, scratch_operands = 1 : i64, tpu.core_type = #tpu.core_type<tc>, window_params = [{transform_indices = @transform_0, window_bounds = array<i64: 1, 1, 32, 64>}, {transform_indices = @transform_1, window_bounds = array<i64: 256, 384>}, {transform_indices = @transform_2, window_bounds = array<i64: 1, 24, 384>}]} {
    %c0 = arith.constant 0 : index
    %c0_0 = arith.constant 0 : index
    %c0_1 = arith.constant 0 : index
    %c0_2 = arith.constant 0 : index
    %0 = vector.load %arg3[%c0, %c0_0, %c0_1, %c0_2] : memref<1x1x32x64xbf16, #tpu.memory_space<vmem>>, vector<1x1x32x64xbf16>
    %1 = vector.shape_cast %0 : vector<1x1x32x64xbf16> to vector<32x64xbf16>
    %2 = vector.extract_strided_slice %1 {offsets = [0, 0], sizes = [24, 64], strides = [1, 1]} : vector<32x64xbf16> to vector<24x64xbf16>
    %c0_3 = arith.constant 0 : index
    %c0_4 = arith.constant 0 : index
    %3 = vector.load %arg6[%c0_3, %c0_4] : memref<24x256xbf16, #tpu.memory_space<vmem>>, vector<24x64xbf16>
    tpu.vector_store %arg6[%c0_3, %c0_4], %2 {strides = array<i32>} : memref<24x256xbf16, #tpu.memory_space<vmem>>, vector<24x64xbf16>,
    %4 = vector.extract_strided_slice %1 {offsets = [1, 0], sizes = [24, 64], strides = [1, 1]} : vector<32x64xbf16> to vector<24x64xbf16>
    %c0_5 = arith.constant 0 : index
    %c64 = arith.constant 64 : index
    %5 = vector.load %arg6[%c0_5, %c64] : memref<24x256xbf16, #tpu.memory_space<vmem>>, vector<24x64xbf16>
    tpu.vector_store %arg6[%c0_5, %c64], %4 {strides = array<i32>} : memref<24x256xbf16, #tpu.memory_space<vmem>>, vector<24x64xbf16>,
    %6 = vector.extract_strided_slice %1 {offsets = [2, 0], sizes = [24, 64], strides = [1, 1]} : vector<32x64xbf16> to vector<24x64xbf16>
    %c0_6 = arith.constant 0 : index
    %c128 = arith.constant 128 : index
    %7 = vector.load %arg6[%c0_6, %c128] : memref<24x256xbf16, #tpu.memory_space<vmem>>, vector<24x64xbf16>
    tpu.vector_store %arg6[%c0_6, %c128], %6 {strides = array<i32>} : memref<24x256xbf16, #tpu.memory_space<vmem>>, vector<24x64xbf16>,
    %8 = vector.extract_strided_slice %1 {offsets = [3, 0], sizes = [24, 64], strides = [1, 1]} : vector<32x64xbf16> to vector<24x64xbf16>
    %c0_7 = arith.constant 0 : index
    %c192 = arith.constant 192 : index
    %9 = vector.load %arg6[%c0_7, %c192] : memref<24x256xbf16, #tpu.memory_space<vmem>>, vector<24x64xbf16>
    tpu.vector_store %arg6[%c0_7, %c192], %8 {strides = array<i32>} : memref<24x256xbf16, #tpu.memory_space<vmem>>, vector<24x64xbf16>,
    %c0_8 = arith.constant 0 : index
    %c0_9 = arith.constant 0 : index
    %10 = vector.load %arg6[%c0_8, %c0_9] : memref<24x256xbf16, #tpu.memory_space<vmem>>, vector<24x256xbf16>
    %c0_10 = arith.constant 0 : index
    %c0_11 = arith.constant 0 : index
    %11 = vector.load %arg4[%c0_10, %c0_11] : memref<256x384xbf16, #tpu.memory_space<vmem>>, vector<256x384xbf16>
    %cst = arith.constant dense<0.000000e+00> : vector<24x384xf32>
    %12 = tpu.matmul %10, %11, %cst {dimension_numbers = #tpu.dot_dimension_numbers<[1], [0], [0], [1], [0, 0, 1, 1], [], []>} : vector<24x256xbf16>, vector<256x384xbf16>, vector<24x384xf32> -> vector<24x384xf32>
    %c0_12 = arith.constant 0 : index
    %c0_13 = arith.constant 0 : index
    %c0_14 = arith.constant 0 : index
    %13 = vector.load %arg5[%c0_12, %c0_13, %c0_14] : memref<1x24x384xf32, #tpu.memory_space<vmem>>, vector<1x24x384xf32>
    %14 = vector.shape_cast %13 : vector<1x24x384xf32> to vector<24x384xf32>
    %15 = vector.shape_cast %12 : vector<24x384xf32> to vector<1x24x384xf32>
    tpu.vector_store %arg5[%c0_12, %c0_13, %c0_14], %15 {strides = array<i32>} : memref<1x24x384xf32, #tpu.memory_space<vmem>>, vector<1x24x384xf32>,
    return
  }
  func.func @transform_0(%arg0: i32, %arg1: i32, %arg2: i32) -> (i32, i32, i32, i32) {
    %c0_i32 = arith.constant 0 : i32
    %c0_i32_0 = arith.constant 0 : i32
    %c0_i32_1 = arith.constant 0 : i32
    return %arg1, %arg0, %c0_i32, %c0_i32_0 : i32, i32, i32, i32
  }
  func.func @transform_1(%arg0: i32, %arg1: i32, %arg2: i32) -> (i32, i32) {
    %c0_i32 = arith.constant 0 : i32
    %c0_i32_0 = arith.constant 0 : i32
    return %c0_i32, %arg2 : i32, i32
  }
  func.func @transform_2(%arg0: i32, %arg1: i32, %arg2: i32) -> (i32, i32, i32) {
    %c0_i32 = arith.constant 0 : i32
    return %arg1, %arg0, %arg2 : i32, i32, i32
  }
}

</mosaic_0001>

<bundles_post_ra>
// kernel: tpu_custom_call.1
= control target key start
LH: loop header
LB: loop body
LE: loop exit
PB: predicated region body
PF: predicated region fallthrough
CT: control target
= control target key end

     0   :  { %7 = vsyncpa [#allocation4], 0  ;;  %s1609_s0 = inlined_call_operand.hbm [shape: bf16[2,1,32,64], index: 0, kind: input, shape index: {}]   ;;  %s1610_s1 = inlined_call_operand.hbm [shape: bf16[256,384], index: 1, kind: input, shape index: {}]   ;;  %s1611_s2 = inlined_call_operand.hbm [shape: f32[2,24,384], index: 2, kind: output, shape index: {}]  }
   0x1   :  { %9 = vsyncpa [#allocation4 + $0x1], 0 }
   0x2   :  { %10 = vsyncpa [#allocation7], 0 }
   0x3   :  { %11 = vsyncpa [#allocation5], 0 }
   0x4   :  { %13 = vsyncpa [#allocation5 + $0x1], 0  ;;  %s1318_s9 = smov 0   ;;  %s1320_s10 = smov 0  }
   0x5   :  { %s1322_s11 = smov 0   ;;  %s1324_s12 = smov 0  }
   0x6   :  { %s1326_s13 = smov 0   ;;  %s1328_s14 = smov 0  }
   0x7 LB: > { %s903_s15 = sadd.s32 4294967295, %s1291_s14   ;;  %s904_s16 = sadd.s32 4294967294, %s1291_s14   ;;  %s1291_s14 = sphi %s1328_s14, %s19_s14   ;;  %s1287_s13 = sphi %s1326_s13, %s1641_s13   ;;  %s1283_s12 = sphi %s1324_s12, %s1640_s12   ;;  %s1279_s11 = sphi %s1322_s11, %s1639_s11   ;;  %s1275_s10 = sphi %s1320_s10, %s1638_s10   ;;  %s1271_s9 = sphi %s1318_s9, %s1637_s9  }
   0x8   : > { %p60_p0 = scmp.ne.s32.totalorder %s1275_s10, %s1271_s9  ;;  %p1352_p1 = scmp.eq.s32.totalorder %s903_s15, 0 }
   0x9   : > { %p1356_p2 = scmp.eq.s32.totalorder %s903_s15, 1  ;;  %p120_p3 = scmp.eq.s32.totalorder %s904_s16, 1 }
   0xa   : > { %s1616_s17 = scalar_select %p1352_p1, 1, 0 }
   0xb   : > { %s1617_s18 = scalar_select %p1356_p2, 1, 0 }
   0xc   : > { %p1362_p4 = por %p1352_p1, %p60_p0  ;;  %p905_p5 = scmp.ge.s32.totalorder %s1291_s14, 1 }
   0xd   : > { %p1367_p6 = por %p120_p3, %p60_p0  ;;  %p127_p7 = scmp.lt.s32.totalorder %s1291_s14, 3 }
   0xe   : > { %s1618_s19 = scalar_select %p1362_p4, 1, 0 }
   0xf   : > { %s1619_s20 = scalar_select %p1367_p6, 1, 0 }
  0x10   : > { %p1372_p8 = pnand %p905_p5, %p127_p7  ;;  %s1293_s22 = smov [#allocation6]  }
  0x11   : > { %s142_s23 = sshll.u32 %s1293_s22, 4  ;;  %s34_s25 = sadd.s32 1, %s1287_s13  ;;  %s143_s23 = int_to_ptr.vmem [resolvable:$true] %s142_s23 }
  0x12   : > { %s1620_s21 = scalar_select %p1372_p8, 1, 0 }
  0x13   : > { %p1009_p9 = pneg %p1372_p8  ;;  %s1147_s28 = scalar_lea.hbm %s1610_s1, 6144 }
  0x14   : > { %p1148_p12 = scmp.ne.s32.totalorder %s1610_s1, %s1147_s28  ;;  %p1154_p5 = scmp.lt.u32.totalorder %s1147_s28, %s1610_s1 }
  0x15   : > { %p1381_p11 = pnand %p1009_p9, %p1352_p1 }
  0x17   : > { %p1149_p13 = pneg %p1381_p11 }
  0x19   : > { %p1150_p0 = pnand %p1149_p13, %p1148_p12 }
  0x1b   : > { %p1151_p3 = pneg %p1150_p0 }
  0x1d   : > { %p1156_p7 = pnand %p1154_p5, %p1151_p3 }
  0x1f   : > { %1159 = shalt.err (!%p1156_p7)
}
  0x20   : > { %s1160_s5 = scalar_lea.vmem %s143_s23, 6144  ;;  %p1168_p1 = scmp.lt.s32.totalorder %s143_s23, %s143_s23 }
  0x21   : > { %p1161_p9 = scmp.ne.s32.totalorder %s143_s23, %s1160_s5  ;;  %p1169_p4 = scmp.lt.s32.totalorder %s1160_s5, %s1160_s5 }
  0x23   : > { %p1163_p10 = pnand %p1161_p9, %p1149_p13  ;;  %p1170_p8 = por %p1169_p4, %p1168_p1 }
  0x25   : > { %p1164_p6 = pneg %p1163_p10 }
  0x27   : > { %p1171_p2 = pnand %p1170_p8, %p1164_p6 }
  0x29   : > { %1174 = shalt.err (!%p1171_p2)
}
  0x2a   : > { %s1294_s6 = smov 192   ;;  %s1295_s7 = smov 12  }
  0x2b   : > { %1012 = dma.hbm_to_vmem [thread:$0]  (!%p1381_p11), %s1610_s1, 6144, %s143_s23, [#allocation7], %s1294_s6, %s1294_s6, %s1295_s7  }
  0x2c   : > { %p36_p1 = scmp.ge.s32.totalorder %s34_s25, 2  ;;  %s47_s16 = sadd.s32 1, %s1279_s11 }
  0x2d   : > { %p54_p2 = scmp.ne.s32.totalorder %s1279_s11, %s1275_s10  ;;  %p55_p4 = scmp.eq.s32.totalorder %s1291_s14, 0 }
  0x2e   : > { %s1643_s25 = smov (%p36_p1, %s34_s25), 0  ;;  %p1623_p8 = scmp.ne.s32.totalorder %s1617_s18, 0 }
  0x2f   : > { %p1408_p6 = por %p55_p4, %p54_p2  ;;  %s42_s24 = ssub.s32 %s1287_s13, %s1643_s25 }
  0x30   : > { %p1414_p10 = por %p1623_p8, %p54_p2  ;;  %p1022_p12 = scmp.lt.s32.totalorder %s1291_s14, 2 }
  0x31   : > { %p45_p11 = scmp.eq.s32.totalorder %s42_s24, 0  ;;  %s156_s23 = sand.u32 1, %s1279_s11  }
  0x32   : > { %s908_s27 = sshll.u32 %s156_s23, 4  ;;  %s970_s29 = sshll.u32 %s1287_s13, 8 }
  0x33   : > { %s1423_s28 = scalar_select %p45_p11, %s1279_s11, %s47_s16  }
  0x34   : > { %s1429_s4 = scalar_lea.hbm %s1609_s0, %s970_s29  ;;  %s160_s18 = scalar_lea.vmem [#allocation3], %s908_s27 }
  0x35   : > { %s169_s5 = sshll.u32 %s160_s18, 4  ;;  %p1435_p13 = pnand %p1022_p12, %p1408_p6  ;;  %s1431_s5 = int_to_ptr.vmem [resolvable:$true] %s169_s5 }
  0x36   : > { %s1439_s7 = scalar_lea.sflag [#allocation4], %s156_s23  ;;  %s1175_s8 = scalar_lea.hbm %s1429_s4, 256 }
  0x37   : > { %p1176_p0 = scmp.ne.s32.totalorder %s1429_s4, %s1175_s8  ;;  %p1177_p3 = pneg %p1435_p13 }
  0x38   : > { %s1180_s22 = scalar_lea.hbm %s1609_s0, 512  ;;  %p1181_p9 = scmp.lt.u32.totalorder %s1429_s4, %s1609_s0 }
  0x39   : > { %p1178_p5 = pnand %p1177_p3, %p1176_p0  ;;  %p1182_p1 = scmp.lt.u32.totalorder %s1180_s22, %s1175_s8 }
  0x3a   : > { %p1184_p4 = scmp.lt.u32.totalorder %s1175_s8, %s1429_s4 }
  0x3b   : > { %p1179_p7 = pneg %p1178_p5  ;;  %p1183_p2 = por %p1182_p1, %p1181_p9 }
  0x3d   : > { %p1185_p6 = por %p1184_p4, %p1183_p2 }
  0x3f   : > { %p1186_p8 = pnand %p1185_p6, %p1179_p7 }
  0x41   : > { %1189 = shalt.err (!%p1186_p8)
}
  0x42   : > { %s1190_s23 = scalar_lea.vmem %s1431_s5, 256  ;;  %s1296_s29 = smov [#allocation3]  }
  0x43   : > { %p1191_p12 = scmp.ne.s32.totalorder %s1431_s5, %s1190_s23  ;;  %s1195_s30 = sshll.u32 %s1296_s29, 4  ;;  %s1196_s30 = int_to_ptr.vmem [resolvable:$false] %s1195_s30 }
  0x44   : > { %s1197_s3 = scalar_lea.vmem %s1196_s30, 512  ;;  %p1198_p5 = scmp.lt.s32.totalorder %s1431_s5, %s1196_s30 }
  0x45   : > { %p1193_p11 = pnand %p1191_p12, %p1177_p3  ;;  %p1199_p9 = scmp.lt.s32.totalorder %s1197_s3, %s1190_s23 }
  0x47   : > { %p1194_p0 = pneg %p1193_p11  ;;  %p1200_p1 = por %p1199_p9, %p1198_p5 }
  0x49   : > { %p1201_p2 = pnand %p1200_p1, %p1194_p0 }
  0x4b   : > { %1204 = shalt.err (!%p1201_p2)
}
  0x4c   : > { %s1297_s18 = smov 64   ;;  %s1298_s8 = smov 4  }
  0x4d   : > { %1016 = dma.hbm_to_vmem [thread:$0]  (!%p1435_p13), %s1429_s4, 256, %s1431_s5, %s1439_s7, %s1297_s18, %s1297_s18, %s1298_s8  }
  0x4e   : > { %p1626_p3 = scmp.ne.s32.totalorder %s1620_s21, 0 }
  0x4f   : > { %s1470_s15 = sand.u32 (!%p1626_p3), 1, %s1275_s10   ;;  %p1627_p7 = scmp.ne.s32.totalorder (!%p1626_p3), %s1618_s19, 0 }
  0x50   : > { %181 = sbr.rel (%p1626_p3) target bundleno = 469 (0x1d5), region = 28  ;;  %s912_s16 = sshll.u32 (!%p1626_p3), %s1470_s15, 4 }
  0x51   : > { %s184_s22 = scalar_lea.sflag (!%p1626_p3), [#allocation4], %s1470_s15  ;;  %s187_s24 = scalar_lea.vmem (!%p1626_p3), [#allocation3], %s912_s16 }
  0x57   : > { %1258 = dma.done.wait (%p1627_p7), %s184_s22, 256  }
  0x58   : > { %1260 = vsyncadd (%p1627_p7), %s184_s22, 4294967040  ;;  %p1628_p4 = scmp.ne.s32.totalorder %s1616_s17, 0 }
  0x5a   : > { %1262 = dma.done.wait (%p1628_p4), [#allocation7], 6144  }
  0x5b   : > { %1264 = vsyncadd (%p1628_p4), [#allocation7], 4294961152  ;;  %vm297_vm0 = vsmask.f32 2304  ;;  %vm220_vm1 = vcmask 519168   ;;  %vm278_vm5 = vcmask 1042432  }
  0x5c   : > { %vm298_vm2 = vsmask.f32 6416  ;;  %vm224_vm3 = vsmask.f32 3328  ;;  %vm225_vm4 = vsmask.f32 7440 }
  0x5d   : > { %v1482_v0 = vld [vmem:[%s187_s24] sm:$0xf]  ;;  %v1484_v1 = vld [vmem:[%s187_s24 + $0x4] sm:$0xf]  ;;  %v1486_v2 = vld [vmem:[%s187_s24 + $0x8] sm:$0xf] }
  0x5e   : > { %v228_v3 = vshrl.u32 %v1482_v0, 16  ;;  %v231_v4 = vshll.u32 %v1482_v0, 16  ;;  %v237_v5 = vshll.u32 %v1484_v1, 16  ;;  %v241_v6 = vshrl.u32 %v1484_v1, 16  ;;  %v1492_v7 = vld [vmem:[%s187_s24 + $0xc] sm:$0xf]  ;;  %vm1505_vm6 = vmor %vm297_vm0, %vm298_vm2 }
  0x5f   : > { %221 = vst.msk [vmem:[#allocation2] sm:$0xf] %vm220_vm1, %v1482_v0  ;;  %222 = vst.msk [vmem:[#allocation2 + $0x8] sm:$0xf] %vm220_vm1, %v1484_v1  ;;  %v247_v8 = vshll.u32 %v1486_v2, 16  ;;  %v251_v9 = vshrl.u32 %v1486_v2, 16 }
  0x60   : > { %223 = vst.msk [vmem:[#allocation2 + $0x10] sm:$0xf] %vm220_vm1, %v1486_v2  ;;  %v257_v10 = vshll.u32 %v1492_v7, 16  ;;  %v300_v11 = vrot.slane %v228_v3, 5  ;;  %v301_v12 = vrot.slane %v231_v4, 6  ;;  %v304_v13 = vrot.slane %v241_v6, 5  ;;  %vm1511_vm7 = vmor %vm224_vm3, %vm225_vm4 }
  0x61   : > { %v305_v14 = vrot.slane %v237_v5, 6  ;;  %v1081_v15 = vld [vmem:[#allocation6 + $0x4] ss:$12 sps:$4 sm:$0xff]   ;;  %v230_v17 = vrot.slane %v228_v3, 4  ;;  %v233_v18 = vrot.slane %v231_v4, 5  ;;  %v239_v19 = vrot.slane %v237_v5, 5 }
  0x62   : > { %v309_v20 = vrot.slane %v251_v9, 5  ;;  %v1083_v21 = vld [vmem:[#allocation6] ss:$12 sps:$4 sm:$0xff]   ;;  %v302_v22 = vor.u32 %v301_v12, %v300_v11  ;;  %v310_v24 = vrot.slane %v247_v8, 6  ;;  %v243_v25 = vrot.slane %v241_v6, 4  ;;  %672 = vmatprep.subr.bf16.mxu0 %v1081_v15  ;;  %s1299_s17 = smov 64  }
  0x63   : > { %v306_v23 = vor.u32 %v305_v14, %v304_v13  ;;  %v1084_v26 = vld [vmem:[#allocation6 + $0x1c] ss:$12 sps:$4 sm:$0xff]   ;;  %v234_v28 = vor.u32 %v233_v18, %v230_v17  ;;  %v314_v29 = vshrl.u32 %v1492_v7, 16  ;;  %v317_v30 = vrot.slane %v257_v10, 6  ;;  %673 = vmatpush1.bf16.msra.mxu0 %v1083_v21  ;;  %v1086_v31 = vld [vmem:[#allocation6 + $0x18] ss:$12 sps:$4 sm:$0xff]  }
  0x64   : > { %vm279_vm8 = vcmask 1046532   ;;  %v303_v32 = vrot.slane %v302_v22, 4  ;;  %v311_v34 = vor.u32 %v310_v24, %v309_v20  ;;  %v244_v35 = vor.u32 %v243_v25, %v239_v19  ;;  %674 = vmatprep.subr.bf16.mxu0 %v1084_v26  ;;  %v1087_v36 = vld [vmem:[#allocation6 + $0x34] ss:$12 sps:$4 sm:$0xff]   ;;  %v1089_v46 = vld [vmem:[#allocation6 + $0x30] ss:$12 sps:$4 sm:$0xff]  }
  0x65   : > { %v308_v33 = vrot.slane %v306_v23, 4  ;;  %v235_v37 = vrot.slane %v234_v28, 4  ;;  %v249_v38 = vrot.slane %v247_v8, 5  ;;  %v316_v39 = vrot.slane %v314_v29, 5  ;;  %vm1523_vm9 = vmor %vm278_vm5, %vm279_vm8  ;;  %v1090_v51 = vld [vmem:[#allocation6 + $0x4c] ss:$12 sps:$4 sm:$0xff]  }
  0x66   : > { %v253_v40 = vrot.slane %v251_v9, 4  ;;  %v307_v41 = vsel %vm1505_vm6, %v303_v32, %v306_v23  ;;  %v245_v42 = vrot.slane %v244_v35, 4  ;;  %v313_v44 = vrot.slane %v311_v34, 4  ;;  %v1092_v60 = vld [vmem:[#allocation6 + $0x48] ss:$12 sps:$4 sm:$0xff]   ;;  %v385_v35 = vld [vmem:[#allocation6 + $0x12c] sm:$0xff] }
  0x67   : > { %320 = vrot.lane.b32.xlu1 %v307_v41, %s1299_s17  ;;  %v240_v43 = vsel %vm1511_vm7, %v235_v37, %v239_v19  ;;  %675 = vmatpush1.bf16.msra.mxu0 %v1086_v31  ;;  %v914_v48 = vrot.slane %v1482_v0, 9  ;;  %v312_v49 = vsel %vm1505_vm6, %v308_v33, %v311_v34  ;;  %v318_v50 = vor.u32 %v317_v30, %v316_v39  ;;  %v1093_v63 = vld [vmem:[#allocation6 + $0x64] ss:$12 sps:$4 sm:$0xff]   ;;  %v1095_v3 = vld [vmem:[#allocation6 + $0x60] ss:$12 sps:$4 sm:$0xff]   ;;  %s999_s19 = smul.u32 72, %s1470_s15 }
  0x68   : > { %v254_v45 = vor.u32 %v253_v40, %v249_v38  ;;  %261 = vrot.lane.b32.xlu0 %v240_v43, %s1299_s17  ;;  %676 = vmatprep.subr.bf16.mxu0 %v1087_v36  ;;  %v283_v52 = vrot.slane %v1484_v1, 5  ;;  %v286_v53 = vrot.slane %v1486_v2, 5  ;;  %v250_v54 = vsel %vm1511_vm7, %v245_v42, %v249_v38  ;;  %v1107_v4 = vld [vmem:[#allocation6 + $0xc8] ss:$12 sps:$4 sm:$0xff]   ;;  %v1112_v8 = vld [vmem:[#allocation6 + $0xe0] ss:$12 sps:$4 sm:$0xff]  }
  0x69   : > { %v289_v55 = vrot.slane %v1492_v7, 5  ;;  %v259_v57 = vrot.slane %v257_v10, 5  ;;  %v319_v62 = vsel %vm1505_vm6, %v313_v44, %v318_v50  ;;  %v1109_v5 = vld [vmem:[#allocation6 + $0x8] ss:$12 sps:$4 sm:$0xff]   ;;  %v1098_v7 = vld [vmem:[#allocation6 + $0x78] ss:$12 sps:$4 sm:$0xff]   ;;  %971 = vmatprep.subr.bf16.mxu1 %v1107_v4 }
  0x6a   : > { %v255_v56 = vrot.slane %v254_v45, 4  ;;  %v284_v58 = vsel %vm1523_vm9, %v914_v48, %v283_v52  ;;  %v285_v59 = vrot.slane %v283_v52, 4  ;;  %v288_v61 = vrot.slane %v286_v53, 4  ;;  %v1096_v6 = vld [vmem:[#allocation6 + $0x7c] ss:$12 sps:$4 sm:$0xff]   ;;  %972 = vmatpush3.bf16.msra.mxu1 %v1109_v5  ;;  %v383_v34 = vld [vmem:[#allocation6 + $0x120] sm:$0xff] }
  0x6b   : > { %322 = vrot.lane.b32.xlu1 %v312_v49, %s1299_s17  ;;  %677 = vmatpush1.bf16.msra.mxu0 %v1089_v46  ;;  %294 = vst.msk [vmem:[#allocation2 + $0x4] sm:$0xf] %vm220_vm1, %v284_v58  ;;  %v1114_v9 = vld [vmem:[#allocation6 + $0x20] ss:$12 sps:$4 sm:$0xff]   ;;  %v1117_v11 = vld [vmem:[#allocation6 + $0xf8] ss:$12 sps:$4 sm:$0xff]   ;;  %v955_v37 = vcombine.low %v383_v34, %v385_v35 }
  0x6c   : > { %263 = vrot.lane.b32.xlu0 %v250_v54, %s1299_s17  ;;  %678 = vmatprep.subr.bf16.mxu0 %v1090_v51  ;;  %v287_v0 = vsel %vm1523_vm9, %v285_v59, %v286_v53  ;;  %v260_v1 = vsel %vm1511_vm7, %v255_v56, %v259_v57  ;;  %v290_v2 = vsel %vm1523_vm9, %v288_v61, %v289_v55  ;;  %v1099_v10 = vld [vmem:[#allocation6 + $0x94] ss:$12 sps:$4 sm:$0xff]   ;;  %v1119_v12 = vld [vmem:[#allocation6 + $0x38] ss:$12 sps:$4 sm:$0xff]   ;;  %v1101_v13 = vld [vmem:[#allocation6 + $0x90] ss:$12 sps:$4 sm:$0xff]  }
  0x6d   : > { %295 = vst.msk [vmem:[#allocation2 + $0xc] sm:$0xf] %vm220_vm1, %v287_v0  ;;  %296 = vst.msk [vmem:[#allocation2 + $0x14] sm:$0xf] %vm220_vm1, %v290_v2  ;;  %973 = vmatprep.subr.bf16.mxu1 %v1112_v8  ;;  %v1102_v14 = vld [vmem:[#allocation6 + $0xac] ss:$12 sps:$4 sm:$0xff]  }
  0x6e   : > { %974 = vmatpush3.bf16.msra.mxu1 %v1114_v9  ;;  %v1122_v15 = vld [vmem:[#allocation6 + $0x110] ss:$12 sps:$4 sm:$0xff]   ;;  %v1104_v16 = vld [vmem:[#allocation6 + $0xa8] ss:$12 sps:$4 sm:$0xff]   ;;  %v1108_v20 = vld [vmem:[#allocation6 + $0xc0] ss:$12 sps:$4 sm:$0xff]  }
  0x6f   : > { %324 = vrot.lane.b32.xlu1 %v319_v62, %s1299_s17  ;;  %679 = vmatpush1.bf16.msra.mxu0 %v1092_v60  ;;  %v1124_v17 = vld [vmem:[#allocation6 + $0x50] ss:$12 sps:$4 sm:$0xff]   ;;  %v1127_v18 = vld [vmem:[#allocation6 + $0x128] ss:$12 sps:$4 sm:$0xff]   ;;  %v1131_v22 = vld [vmem:[#allocation6 + $0x140] ss:$12 sps:$4 sm:$0xff]  }
  0x70   : > { %265 = vrot.lane.b32.xlu0 %v260_v1, %s1299_s17  ;;  %680 = vmatprep.subr.bf16.mxu0 %v1093_v63  ;;  %v1105_v19 = vld [vmem:[#allocation6 + $0xc4] ss:$12 sps:$4 sm:$0xff]   ;;  %v1128_v21 = vld [vmem:[#allocation6 + $0x68] ss:$12 sps:$4 sm:$0xff]   ;;  %v1132_v24 = vld [vmem:[#allocation6 + $0x80] ss:$12 sps:$4 sm:$0xff]  }
  0x71   : > { %975 = vmatprep.subr.bf16.mxu1 %v1117_v11  ;;  %v1110_v23 = vld [vmem:[#allocation6 + $0xdc] ss:$12 sps:$4 sm:$0xff]   ;;  %v1113_v25 = vld [vmem:[#allocation6 + $0xd8] ss:$12 sps:$4 sm:$0xff]   ;;  %v1115_v27 = vld [vmem:[#allocation6 + $0xf4] ss:$12 sps:$4 sm:$0xff]  }
  0x72   : > { %976 = vmatpush3.bf16.msra.mxu1 %v1119_v12  ;;  %v1135_v26 = vld [vmem:[#allocation6 + $0x158] ss:$12 sps:$4 sm:$0xff]   ;;  %v1118_v29 = vld [vmem:[#allocation6 + $0xf0] ss:$12 sps:$4 sm:$0xff]   ;;  %v1123_v33 = vld [vmem:[#allocation6 + $0x108] ss:$12 sps:$4 sm:$0xff]  }
  0x73   : > { %681 = vmatpush1.bf16.msra.mxu0 %v1095_v3  ;;  %977 = vmatprep.subr.bf16.mxu1 %v1122_v15  ;;  %v1137_v28 = vld [vmem:[#allocation6 + $0x98] ss:$12 sps:$4 sm:$0xff]   ;;  %v1140_v30 = vld [vmem:[#allocation6 + $0x170] ss:$12 sps:$4 sm:$0xff]   ;;  %v1133_v42 = vld [vmem:[#allocation6 + $0x154] ss:$12 sps:$4 sm:$0xff]  }
  0x74   : > { %682 = vmatprep.subr.bf16.mxu0 %v1096_v6  ;;  %v1120_v31 = vld [vmem:[#allocation6 + $0x10c] ss:$12 sps:$4 sm:$0xff]   ;;  %v1141_v32 = vld [vmem:[#allocation6 + $0xb0] ss:$12 sps:$4 sm:$0xff]   ;;  %v389_v39 = vld [vmem:[#allocation6 + $0x144] sm:$0xff]  ;;  %vm270_vm10 = vcmask 1043968  }
  0x75   : > { %v1125_v36 = vld [vmem:[#allocation6 + $0x124] ss:$12 sps:$4 sm:$0xff]   ;;  %v387_v38 = vld [vmem:[#allocation6 + $0x138] sm:$0xff]  ;;  %v395_v44 = vld [vmem:[#allocation6 + $0x168] sm:$0xff]  ;;  %s211_s21 = scalar_lea.vmem [#allocation8], %s999_s19  ;;  %s1000_s5 = smul.u32 1152, %s1283_s12 }
  0x76   : > { %978 = vmatpush3.bf16.msra.mxu1 %v1124_v17  ;;  %v1129_v40 = vld [vmem:[#allocation6 + $0x13c] ss:$12 sps:$4 sm:$0xff]   ;;  %v958_v41 = vcombine.low %v387_v38, %v389_v39  ;;  %v397_v45 = vld [vmem:[#allocation6 + $0x174] sm:$0xff]  ;;  %s799_s4 = sshll.u32 %s211_s21, 4  ;;  %s781_s12 = scalar_lea.sflag [#allocation5], %s1470_s15  ;;  %s1555_s4 = int_to_ptr.vmem [resolvable:$true] %s799_s4 }
  0x77   : > { %683 = vmatpush1.bf16.msra.mxu0 %v1098_v7  ;;  %979 = vmatprep.subr.bf16.mxu1 %v1127_v18  ;;  %v1136_v43 = vld [vmem:[#allocation6 + $0x150] ss:$12 sps:$4 sm:$0xff]   ;;  %v1138_v46 = vld [vmem:[#allocation6 + $0x16c] ss:$12 sps:$4 sm:$0xff]   ;;  %v964_v47 = vcombine.low %v395_v44, %v397_v45  ;;  %s1560_s27 = scalar_lea.hbm %s1611_s2, %s1000_s5  ;;  %s1205_s23 = scalar_lea.vmem %s1555_s4, 1152 }
  0x78   : > { %684 = vmatprep.subr.bf16.mxu0 %v1099_v10  ;;  %p1206_p13 = scmp.ne.s32.totalorder %s1555_s4, %s1205_s23  ;;  %s1300_s29 = smov [#allocation8]  }
  0x79   : > { %s1209_s30 = sshll.u32 %s1300_s29, 4  ;;  %s1210_s30 = int_to_ptr.vmem [resolvable:$false] %s1209_s30 }
  0x7a   : > { %980 = vmatpush3.bf16.msra.mxu1 %v1128_v21  ;;  %p1207_p6 = pnand %p1206_p13, %p1414_p10  ;;  %s1211_s3 = scalar_lea.vmem %s1210_s30, 2304 }
  0x7b   : > { %685 = vmatpush1.bf16.msra.mxu0 %v1101_v13  ;;  %981 = vmatprep.subr.bf16.mxu1 %v1131_v22  ;;  %p1212_p12 = scmp.lt.s32.totalorder %s1555_s4, %s1210_s30  ;;  %p1213_p11 = scmp.lt.s32.totalorder %s1211_s3, %s1205_s23 }
  0x7c   : > { %686 = vmatprep.subr.bf16.mxu0 %v1102_v14  ;;  %p1208_p8 = pneg %p1207_p6 }
  0x7d   : > { %p1214_p0 = por %p1213_p11, %p1212_p12 }
  0x7e   : > { %982 = vmatpush3.bf16.msra.mxu1 %v1132_v24 }
  0x7f   : > { %687 = vmatpush1.bf16.msra.mxu0 %v1104_v16  ;;  %983 = vmatprep.subr.bf16.mxu1 %v1135_v26  ;;  %p1215_p5 = pnand %p1214_p0, %p1208_p8 }
  0x80   : > { %688 = vmatprep.subr.bf16.mxu0 %v1105_v19 }
  0x82   : > { %984 = vmatpush3.bf16.msra.mxu1 %v1137_v28 }
  0x83   : > { %689 = vmatpush1.bf16.msra.mxu0 %v1108_v20  ;;  %985 = vmatprep.subr.bf16.mxu1 %v1140_v30 }
  0x84   : > { %690 = vmatprep.subr.bf16.mxu0 %v1110_v23 }
  0x86   : > { %986 = vmatpush3.bf16.msra.mxu1 %v1141_v32 }
  0x87   : > { %691 = vmatpush1.bf16.msra.mxu0 %v1113_v25 }
  0x88   : > { %692 = vmatprep.subr.bf16.mxu0 %v1115_v27 }
  0x8b   : > { %693 = vmatpush1.bf16.msra.mxu0 %v1118_v29 }
  0x8c   : > { %694 = vmatprep.subr.bf16.mxu0 %v1120_v31 }
  0x8f   : > { %695 = vmatpush1.bf16.msra.mxu0 %v1123_v33 }
  0x90   : > { %696 = vmatprep.subr.bf16.mxu0 %v1125_v36 }
  0x93   : > { %697 = vmatpush1.bf16.msra.mxu0 %v955_v37 }
  0x94   : > { %698 = vmatprep.subr.bf16.mxu0 %v1129_v40 }
  0x97   : > { %699 = vmatpush1.bf16.msra.mxu0 %v958_v41 }
  0x98   : > { %700 = vmatprep.subr.bf16.mxu0 %v1133_v42 }
  0x9b   : > { %701 = vmatpush1.bf16.msra.mxu0 %v1136_v43 }
  0x9c   : > { %702 = vmatprep.subr.bf16.mxu0 %v1138_v46 }
  0x9f   : > { %703 = vmatpush1.bf16.msra.mxu0 %v964_v47 }
  0xd9   : > { %v321_v48 = vpop.permute.xlu1 %320 }
  0xda   : > { %329 = vst.msk [vmem:[#allocation2 + $0x4] sm:$0xf] %vm270_vm10, %v321_v48  ;;  %v262_v49 = vpop.permute.xlu0 %261 }
  0xdb   : > { %271 = vst.msk [vmem:[#allocation2] sm:$0xf] %vm270_vm10, %v262_v49 }
  0xdd   : > { %v323_v50 = vpop.permute.xlu1 %322 }
  0xde   : > { %330 = vst.msk [vmem:[#allocation2 + $0xc] sm:$0xf] %vm270_vm10, %v323_v50  ;;  %v264_v51 = vpop.permute.xlu0 %263 }
  0xdf   : > { %272 = vst.msk [vmem:[#allocation2 + $0x8] sm:$0xf] %vm270_vm10, %v264_v51 }
  0xe1   : > { %v325_v52 = vpop.permute.xlu1 %324 }
  0xe2   : > { %331 = vst.msk [vmem:[#allocation2 + $0x14] sm:$0xf] %vm270_vm10, %v325_v52  ;;  %v266_v53 = vpop.permute.xlu0 %265 }
  0xe3   : > { %273 = vst.msk [vmem:[#allocation2 + $0x10] sm:$0xf] %vm270_vm10, %v266_v53 }
  0xe5   : > { %v1144_v55 = vld [vmem:[#allocation2 + $0x4] ss:$8 sps:$4 sm:$0xff]  }
  0xe6   : > { %v1142_v54 = vld [vmem:[#allocation2] ss:$8 sps:$4 sm:$0xff]   ;;  %704 = vmatprep.mubr.bf16.mxu0 %v1144_v55  ;;  %755 = vmatprep.mubr.bf16.mxu1 %v1144_v55 }
  0xe7   : > { %705 = vmatmul.mubr.bf16.vlgmr.msra.gmra.mrb[0].mxu0 %v1142_v54  ;;  %756 = vmatmul.mubr.bf16.vlgmr.msra.gmra.mrb[0].mxu1 %v1142_v54 }
  0xea   : > { %v334_v56 = vld [vmem:[#allocation2 + $0x10] sm:$0xff] }
  0xeb   : > { %v918_v57 = vcombine.high %v334_v56, %v334_v56  ;;  %v917_v58 = vcombine.low %v334_v56, %v334_v56 }
  0xed   : > { %714 = vmatprep.mubr.bf16.mxu0 %v918_v57  ;;  %763 = vmatprep.mubr.bf16.mxu1 %v918_v57 }
  0xef   : > { %715 = vmatmul.mubr.bf16.gmra.mrb[4].mxu0 %v917_v58  ;;  %764 = vmatmul.mubr.bf16.gmra.mrb[4].mxu1 %v917_v58 }
 0x1ba   : > { %v706_v59 = vpop.f32.mrb[0].mxu0  ;;  %v987_v60 = vpop.f32.mrb[0].mxu1 }
 0x1bb   : > { %771 = vst [vmem:[%s211_s21] sm:$0xff] %v706_v59  ;;  %v708_v61 = vpop.f32.mrb[1].mxu0  ;;  %v988_v62 = vpop.f32.mrb[1].mxu1 }
 0x1bc   : > { %772 = vst [vmem:[%s211_s21 + $0x8] sm:$0xff] %v708_v61  ;;  %v989_v63 = vadd.f32 %v988_v62, %v987_v60  ;;  %v710_v0 = vpop.f32.mrb[2].mxu0  ;;  %v990_v1 = vpop.f32.mrb[2].mxu1 }
 0x1bd   : > { %774 = vst [vmem:[%s211_s21 + $0x18] sm:$0xff] %v710_v0  ;;  %v712_v2 = vpop.f32.mrb[3].mxu0  ;;  %v991_v3 = vpop.f32.mrb[3].mxu1 }
 0x1be   : > { %773 = vst [vmem:[%s211_s21 + $0x10] sm:$0xff] %v989_v63  ;;  %775 = vst [vmem:[%s211_s21 + $0x20] sm:$0xff] %v712_v2  ;;  %v992_v4 = vadd.f32 %v991_v3, %v990_v1 }
 0x1c0   : > { %776 = vst [vmem:[%s211_s21 + $0x28] sm:$0xff] %v992_v4 }
 0x1c2   : > { %v716_v5 = vpop.f32.mrb[4].mxu0  ;;  %v993_v6 = vpop.f32.mrb[4].mxu1 }
 0x1c3   : > { %777 = vst [vmem:[%s211_s21 + $0x30] sm:$0xff] %v716_v5  ;;  %v718_v7 = vpop.f32.mrb[5].mxu0  ;;  %v994_v8 = vpop.f32.mrb[5].mxu1 }
 0x1c4   : > { %778 = vst [vmem:[%s211_s21 + $0x38] sm:$0xff] %v718_v7  ;;  %v995_v9 = vadd.f32 %v994_v8, %v993_v6  ;;  %v720_v10 = vpop.f32.mrb[6].mxu0  ;;  %v996_v11 = vpop.f32.mrb[6].mxu1 }
 0x1c5   : > { %v721_v12 = vpop.f32.mrb[7].mxu0  ;;  %v997_v13 = vpop.f32.mrb[7].mxu1 }
 0x1c6   : > { %779 = vst [vmem:[%s211_s21 + $0x40] sm:$0xff] %v995_v9 }
 0x1c7   : > { %1218 = shalt.err (!%p1215_p5)
}
 0x1c8   : > { %s1219_s18 = scalar_lea.hbm %s1560_s27, 1152  ;;  %s1223_s22 = scalar_lea.hbm %s1611_s2, 2304 }
 0x1c9   : > { %p1220_p9 = scmp.ne.s32.totalorder %s1560_s27, %s1219_s18  ;;  %p1224_p3 = scmp.lt.u32.totalorder %s1560_s27, %s1611_s2 }
 0x1ca   : > { %p1225_p7 = scmp.lt.u32.totalorder %s1223_s22, %s1219_s18  ;;  %p1227_p13 = scmp.lt.u32.totalorder %s1219_s18, %s1560_s27 }
 0x1cb   : > { %p1221_p1 = pnand %p1220_p9, %p1414_p10 }
 0x1cc   : > { %p1226_p4 = por %p1225_p7, %p1224_p3 }
 0x1cd   : > { %p1222_p2 = pneg %p1221_p1 }
 0x1ce   : > { %p1228_p6 = por %p1227_p13, %p1226_p4 }
 0x1d0   : > { %p1229_p8 = pnand %p1228_p6, %p1222_p2 }
 0x1d2   : > { %1232 = shalt.err (!%p1229_p8)
}
 0x1d3   : > { %s1301_s19 = smov 384   ;;  %s1302_s21 = smov 24  }
 0x1d4   : > { %1007 = dma.vmem_to_hbm [thread:$0]  (%p1414_p10), %s1555_s4, 1152, %s1560_s27, %s781_s12, %s1301_s19, %s1301_s19, %s1302_s21  }
 0x1d5 PF: > { %s814_s5 = sand.u32 1, %s1271_s9   ;;  %p1635_p12 = scmp.ne.s32.totalorder %s1619_s20, 0 }
 0x1d6   : > { %p1636_p11 = scmp.ge.s32.totalorder %s1291_s14, 2  ;;  %s815_s6 = scalar_lea.sflag [#allocation5], %s814_s5 }
 0x1d8   : > { %p1018_p0 = pnand %p1636_p11, %p1635_p12 }
 0x1da   : > { %1266 = dma.done.wait (!%p1018_p0), %s815_s6, 1152  }
 0x1db   : > { %1268 = vsyncadd (!%p1018_p0), %s815_s6, 4294966144  ;;  %s19_s14 = sadd.s32 1, %s1291_s14   ;;  %s1637_s9 = smov %s1275_s10 }
 0x1dc   : > { %p16_p5 = scmp.ge.s32.totalorder %s19_s14, 4   ;;  %s1638_s10 = smov %s1279_s11 }
 0x1dd   : > { %s1639_s11 = smov %s1423_s28  ;;  %s1640_s12 = smov %s1287_s13 }
 0x1de   : > { %s1641_s13 = smov %s1643_s25  ;;  %18 = sbr.rel (!%p16_p5) target bundleno = 7 (0x7), region = 78 }
 0x1e5   :  { %820 = vsyncpa [#allocation4], 1 }
 0x1e6   :  { %822 = vsyncpa [#allocation4 + $0x1], 1 }
 0x1e7   :  { %823 = vsyncpa [#allocation7], 1 }
 0x1e8   :  { %824 = vsyncpa [#allocation5], 1 }
 0x1e9   :  { %826 = vsyncpa [#allocation5 + $0x1], 1 }

</bundles_post_ra>
